<compile_context>
chip_gen: v7x
topology: tpu7x:2x2x1
jax: 0.10.0
libtpu: 0.0.40
codegen_flags: <defaults>
</compile_context>

<pallas_src>
import jax
import jax.numpy as jnp
from jax.experimental import pallas as pl
from jax.experimental.pallas import tpu as pltpu


def _make_kernel(NT, NR, c_vals):
    """Build the kernel; constellation points are compile-time immediates."""
    M = len(c_vals)
    inv_NT = 1.0 / float(NT)

    def kernel(Hf_ref, y_ref, x0_ref, sa_ref, sb_ref, W_ref, wflat_ref,
               Wbig_ref, nhg_ref, out_ref):
        y = y_ref[...]            # (NR, BT)
        x0 = x0_ref[...]          # (NT, BT)

        # ---- MMNet_linear: single fused pass over H ------------------------
        # Hx[r, b]  = sum_t H[b, r, t] * x0[t, b]   (per-batch matvec, VPU MACs)
        # trHTH[b]  = sum_{r,t} H[b, r, t]^2        (same pass over H)
        Hx = jnp.zeros_like(y)
        hh = jnp.zeros_like(y)
        for t in range(NT):                        # static unroll, NT small
            Ht = Hf_ref[t * NR:(t + 1) * NR, :]    # (NR, BT) slab of H
            Hx = Hx + Ht * x0[t:t + 1, :]
            hh = hh + Ht * Ht
        trHTH = jnp.sum(hh, axis=0, keepdims=True)           # (1, BT)

        rt = y - Hx                                           # (NR, BT)
        # zt = x0 + W @ rt  ->  one (NT, NR) x (NR, BT) MXU matmul
        zt = x0 + jnp.dot(W_ref[...], rt,
                          preferred_element_type=jnp.float32)  # (NT, BT)

        # ---- MMNet_denoiser -------------------------------------------------
        r2 = jnp.sum(rt * rt, axis=0, keepdims=True)          # (1, BT)
        v2 = (r2 - sa_ref[...]) / trHTH                       # (1, BT)
        v2 = jnp.maximum(v2, 1e-9)

        Hf = Hf_ref[...]                                      # (NT*NR, BT)
        # tr(W H[b]) via one (1, NT*NR) x (NT*NR, BT) matmul
        trWH = jnp.dot(wflat_ref[...], Hf,
                       preferred_element_type=jnp.float32)    # (1, BT)
        # ||W H[b]||_F^2 via one (NT*NT, NT*NR) x (NT*NR, BT) matmul
        WHall = jnp.dot(Wbig_ref[...], Hf,
                        preferred_element_type=jnp.float32)   # (NT*NT, BT)
        frob = jnp.sum(WHall * WHall, axis=0, keepdims=True)  # (1, BT)
        # trace(C C^T), C = I - W H  ==  NT - 2 tr(WH) + ||WH||_F^2   (>= 0)
        trC = jnp.maximum(float(NT) - 2.0 * trWH + frob, 0.0)

        tau2 = trC * v2 * inv_NT + sb_ref[...]                # (1, BT)
        # -(z-c)^2 / (2 * tau2 / gamma)  ==  (z-c)^2 * (-gamma/2) * (1/tau2)
        neg_half_inv = nhg_ref[...] * (1.0 / tau2)            # (NT, BT)

        # ---- gaussian denoiser: static loop over the M constellation points
        logits = []
        for cm in c_vals:                                     # python-float immediates
            d = zt - cm
            logits.append(d * d * neg_half_inv)               # (NT, BT)
        amax = logits[0]
        for m in range(1, M):
            amax = jnp.maximum(amax, logits[m])
        ssum = jnp.zeros_like(zt)
        wsum = jnp.zeros_like(zt)
        for m in range(M):
            e = jnp.exp(logits[m] - amax)
            ssum = ssum + e
            wsum = wsum + e * c_vals[m]
        out_ref[...] = wsum / ssum                            # (NT, BT) lane-dense

    return kernel


def _pick_batch_tile(B, NT, NR, vmem_budget_bytes=12 * 1024 * 1024):
    """Largest lane (batch) tile that fits a conservative VMEM budget.

    Prefers a tile that leaves >= 2 grid steps so the 'parallel' batch axis can
    shard across both v7x TensorCores.  Budget is well under v7x's 32 MiB
    default scoped-VMEM limit (64 MiB physical).
    """
    # rough f32 bytes per batch column: double-buffered inputs/outputs + the
    # main in-kernel temporaries (WH_all, accumulators, softmax terms).
    per_col = 4 * (2 * (NT * NR + NR + 2 * NT + 2) + NT * NT + 3 * NR + 8 * NT)
    cap = max(128, (vmem_budget_bytes // max(per_col, 1)) // 128 * 128)
    cands = [c for c in (1024, 512, 256, 128) if c <= cap and B % c == 0]
    for c in cands:
        if B // c >= 2:
            return c
    if cands:
        return cands[0]
    return B          # tiny / awkward B: whole batch in one (full-dim) tile


def mmnet_forward(H, y, x_out, noise_sigma, Wr, Wi, gamma, constellation):
    """Hoist batch-invariant quantities, put batch on lanes, call the kernel."""
    H = H.astype(jnp.float32)
    B, NR, NT = H.shape

    # W = [[Wr, -Wi], [Wi, Wr]] -> (NT, NR), shared across batch
    W = jnp.concatenate(
        [jnp.concatenate([Wr, -Wi], axis=2),
         jnp.concatenate([Wi, Wr], axis=2)], axis=1)[0].astype(jnp.float32)

    wflat = W.reshape(1, NT * NR)                            # matches Hf layout
    Wbig = jnp.kron(jnp.eye(NT, dtype=jnp.float32), W)       # (NT*NT, NT*NR)
    tws = jnp.sum(W * W) / (2.0 * NT)                        # trace(W W^T)/(2 NT)

    # batch-on-lanes layouts (pure layout plumbing, done once in the wrapper)
    Hf = jnp.transpose(H, (2, 1, 0)).reshape(NT * NR, B)     # [t*NR+r, b] = H[b,r,t]
    yT = y.astype(jnp.float32).T                             # (NR, B)
    x0T = x_out.astype(jnp.float32).T                        # (NT, B)
    sig2 = (noise_sigma.astype(jnp.float32) ** 2).reshape(1, B)
    sa = (0.5 * NR) * sig2                                   # (1, B)
    sb = sig2 * tws                                          # (1, B)
    nhg = (-0.5) * gamma[0].astype(jnp.float32)              # (NT, 1)

    c_vals = tuple(float(v) for v in jax.device_get(constellation).ravel())

    BT = _pick_batch_tile(B, NT, NR)
    grid = (B // BT,)
    kernel = _make_kernel(NT, NR, c_vals)

    outT = pl.pallas_call(
        kernel,
        out_shape=jax.ShapeDtypeStruct((NT, B), jnp.float32),
        grid=grid,
        in_specs=[
            pl.BlockSpec((NT * NR, BT), lambda b: (0, b)),        # H (flat, lanes=B)
            pl.BlockSpec((NR, BT), lambda b: (0, b)),             # y
            pl.BlockSpec((NT, BT), lambda b: (0, b)),             # x0
            pl.BlockSpec((1, BT), lambda b: (0, b)),              # 0.5*NR*sigma^2
            pl.BlockSpec((1, BT), lambda b: (0, b)),              # sigma^2 * trW/(2NT)
            pl.BlockSpec((NT, NR), lambda b: (0, 0)),             # W (shared)
            pl.BlockSpec((1, NT * NR), lambda b: (0, 0)),         # W flattened
            pl.BlockSpec((NT * NT, NT * NR), lambda b: (0, 0)),   # kron(I, W)
            pl.BlockSpec((NT, 1), lambda b: (0, 0)),              # -0.5 * gamma
        ],
        out_specs=pl.BlockSpec((NT, BT), lambda b: (0, b)),
        compiler_params=pltpu.CompilerParams(
            dimension_semantics=("parallel",)),
    )(Hf, yT, x0T, sa, sb, W, wflat, Wbig, nhg)

    return outT.T                                            # (B, NT)


def mmnet_forward_ref(H, y, x_out, noise_sigma, Wr, Wi, gamma, constellation):
    """Pure-JAX reference mirroring the PyTorch forward (in f32)."""
    B = H.shape[0]
    NR = H.shape[1]
    NT = H.shape[2]
    M = constellation.shape[0]
    W1 = jnp.concatenate(
        [jnp.concatenate([Wr, -Wi], axis=2),
         jnp.concatenate([Wi, Wr], axis=2)], axis=1)              # (1, NT, NR)
    W = jnp.tile(W1, (B, 1, 1))
    rt = y - jnp.einsum('bij,bj->bi', H, x_out)
    zt = x_out + jnp.einsum('bij,bj->bi', W, rt)
    HTH = jnp.einsum('bij,bik->bjk', H, H)
    tr = jnp.trace(HTH, axis1=1, axis2=2)[:, None]
    v2 = (jnp.sum(rt**2, axis=1, keepdims=True)
          - NR * noise_sigma[:, None] ** 2 / 2) / tr
    v2 = jnp.maximum(v2, 1e-9)[:, :, None]
    C = jnp.eye(NT)[None] - jnp.einsum('bij,bjk->bik', W, H)
    trC = jnp.trace(jnp.einsum('bij,bkj->bik', C, C), axis1=1, axis2=2)
    trW = jnp.trace(jnp.einsum('bij,bkj->bik', W, W), axis1=1, axis2=2)
    tau2 = (1.0 / NT) * trC.reshape(-1, 1, 1) * v2 \
        + noise_sigma.reshape(-1, 1, 1) ** 2 / (2.0 * NT) * trW.reshape(-1, 1, 1)
    tau2_g = tau2 / gamma                                          # (B, NT, 1)
    arg = zt.reshape(-1, 1) - constellation[None, :]
    arg = arg.reshape(-1, NT, M)
    arg = -(arg ** 2) / 2.0 / tau2_g
    p = jax.nn.softmax(arg.reshape(-1, M), axis=1)
    xo = p @ constellation.reshape(M, 1)
    return xo.reshape(-1, NT)


if __name__ == "__main__":
    key = jax.random.PRNGKey(0)
    k1, k2, k3, k4, k5, k6, k7 = jax.random.split(key, 7)

    # module config: NT_in=4, NR_in=8 -> NT=8, NR=16 ; 4-point real constellation
    NT_in, NR_in, B = 4, 8, 256
    NT, NR = 2 * NT_in, 2 * NR_in
    constellation = jnp.array([-3.0, -1.0, 1.0, 3.0], jnp.float32) / jnp.sqrt(10.0)
    M = constellation.shape[0]

    # deterministic parameter init (matches __init__ shapes / distributions)
    Wr = 0.01 * jax.random.normal(k1, (1, NT_in, NR_in), jnp.float32)
    Wi = 0.01 * jax.random.normal(k2, (1, NT_in, NR_in), jnp.float32)
    gamma = 1.0 + 0.1 * jax.random.normal(k3, (1, NT, 1), jnp.float32)

    # inputs
    H = jax.random.normal(k4, (B, NR, NT), jnp.float32) / jnp.sqrt(float(NR))
    x_true = constellation[jax.random.randint(k5, (B, NT), 0, M)]
    noise_sigma = 0.1 + 0.05 * jax.random.uniform(k6, (B,), jnp.float32)
    noise = noise_sigma[:, None] * jax.random.normal(k7, (B, NR), jnp.float32)
    y = jnp.einsum('bij,bj->bi', H, x_true) + noise
    x_out0 = jnp.zeros((B, NT), jnp.float32)

    out = mmnet_forward(H, y, x_out0, noise_sigma, Wr, Wi, gamma, constellation)
    out = jax.block_until_ready(out)

    ref = mmnet_forward_ref(H, y, x_out0, noise_sigma, Wr, Wi, gamma, constellation)
    assert out.shape == (B, NT)
    assert jnp.allclose(out, ref, rtol=1e-4, atol=2e-5), \
        float(jnp.max(jnp.abs(out - ref)))
    print("KERNEL_OK")
</pallas_src>

<mosaic_0001>
module attributes {stable_mosaic.version = 11 : i64} {
  func.func @kernel(%arg0: i32, %arg1: memref<128x128xf32, #tpu.memory_space<vmem>>, %arg2: memref<16x128xf32, #tpu.memory_space<vmem>>, %arg3: memref<8x128xf32, #tpu.memory_space<vmem>>, %arg4: memref<1x128xf32, #tpu.memory_space<vmem>>, %arg5: memref<1x128xf32, #tpu.memory_space<vmem>>, %arg6: memref<8x16xf32, #tpu.memory_space<vmem>>, %arg7: memref<1x128xf32, #tpu.memory_space<vmem>>, %arg8: memref<64x128xf32, #tpu.memory_space<vmem>>, %arg9: memref<8x1xf32, #tpu.memory_space<vmem>>, %arg10: memref<8x128xf32, #tpu.memory_space<vmem>>) attributes {dimension_semantics = [#tpu.dimension_semantics<parallel>], iteration_bounds = array<i64: 2>, scalar_prefetch = 0 : i64, scratch_operands = 0 : i64, tpu.core_type = #tpu.core_type<tc>, window_params = [{transform_indices = @transform_0, window_bounds = array<i64: 128, 128>}, {transform_indices = @transform_1, window_bounds = array<i64: 16, 128>}, {transform_indices = @transform_2, window_bounds = array<i64: 8, 128>}, {transform_indices = @transform_3, window_bounds = array<i64: 1, 128>}, {transform_indices = @transform_4, window_bounds = array<i64: 1, 128>}, {pipeline_mode = #tpu.pipeline_mode<synchronous>, transform_indices = @transform_5, window_bounds = array<i64: 8, 16>}, {pipeline_mode = #tpu.pipeline_mode<synchronous>, transform_indices = @transform_6, window_bounds = array<i64: 1, 128>}, {pipeline_mode = #tpu.pipeline_mode<synchronous>, transform_indices = @transform_7, window_bounds = array<i64: 64, 128>}, {pipeline_mode = #tpu.pipeline_mode<synchronous>, transform_indices = @transform_8, window_bounds = array<i64: 8, 1>}, {transform_indices = @transform_9, window_bounds = array<i64: 8, 128>}]} {
    %c0 = arith.constant 0 : index
    %c0_0 = arith.constant 0 : index
    %0 = vector.load %arg2[%c0, %c0_0] : memref<16x128xf32, #tpu.memory_space<vmem>>, vector<16x128xf32>
    %c0_1 = arith.constant 0 : index
    %c0_2 = arith.constant 0 : index
    %1 = vector.load %arg3[%c0_1, %c0_2] : memref<8x128xf32, #tpu.memory_space<vmem>>, vector<8x128xf32>
    %cst = arith.constant 0.000000e+00 : f32
    %2 = vector.broadcast %cst : f32 to vector<16x128xf32>
    %cst_3 = arith.constant 0.000000e+00 : f32
    %3 = vector.broadcast %cst_3 : f32 to vector<16x128xf32>
    %c0_4 = arith.constant 0 : index
    %c0_5 = arith.constant 0 : index
    %4 = vector.load %arg1[%c0_4, %c0_5] : memref<128x128xf32, #tpu.memory_space<vmem>>, vector<16x128xf32>
    %5 = vector.extract_strided_slice %1 {offsets = [0, 0], sizes = [1, 128], strides = [1, 1]} : vector<8x128xf32> to vector<1x128xf32>
    %6 = vector.broadcast %5 : vector<1x128xf32> to vector<16x128xf32>
    %7 = arith.mulf %4, %6 : vector<16x128xf32>
    %8 = arith.addf %2, %7 : vector<16x128xf32>
    %9 = arith.mulf %4, %4 : vector<16x128xf32>
    %10 = arith.addf %3, %9 : vector<16x128xf32>
    %c16 = arith.constant 16 : index
    %c0_6 = arith.constant 0 : index
    %11 = vector.load %arg1[%c16, %c0_6] : memref<128x128xf32, #tpu.memory_space<vmem>>, vector<16x128xf32>
    %12 = vector.extract_strided_slice %1 {offsets = [1, 0], sizes = [1, 128], strides = [1, 1]} : vector<8x128xf32> to vector<1x128xf32>
    %13 = vector.broadcast %12 : vector<1x128xf32> to vector<16x128xf32>
    %14 = arith.mulf %11, %13 : vector<16x128xf32>
    %15 = arith.addf %8, %14 : vector<16x128xf32>
    %16 = arith.mulf %11, %11 : vector<16x128xf32>
    %17 = arith.addf %10, %16 : vector<16x128xf32>
    %c32 = arith.constant 32 : index
    %c0_7 = arith.constant 0 : index
    %18 = vector.load %arg1[%c32, %c0_7] : memref<128x128xf32, #tpu.memory_space<vmem>>, vector<16x128xf32>
    %19 = vector.extract_strided_slice %1 {offsets = [2, 0], sizes = [1, 128], strides = [1, 1]} : vector<8x128xf32> to vector<1x128xf32>
    %20 = vector.broadcast %19 : vector<1x128xf32> to vector<16x128xf32>
    %21 = arith.mulf %18, %20 : vector<16x128xf32>
    %22 = arith.addf %15, %21 : vector<16x128xf32>
    %23 = arith.mulf %18, %18 : vector<16x128xf32>
    %24 = arith.addf %17, %23 : vector<16x128xf32>
    %c48 = arith.constant 48 : index
    %c0_8 = arith.constant 0 : index
    %25 = vector.load %arg1[%c48, %c0_8] : memref<128x128xf32, #tpu.memory_space<vmem>>, vector<16x128xf32>
    %26 = vector.extract_strided_slice %1 {offsets = [3, 0], sizes = [1, 128], strides = [1, 1]} : vector<8x128xf32> to vector<1x128xf32>
    %27 = vector.broadcast %26 : vector<1x128xf32> to vector<16x128xf32>
    %28 = arith.mulf %25, %27 : vector<16x128xf32>
    %29 = arith.addf %22, %28 : vector<16x128xf32>
    %30 = arith.mulf %25, %25 : vector<16x128xf32>
    %31 = arith.addf %24, %30 : vector<16x128xf32>
    %c64 = arith.constant 64 : index
    %c0_9 = arith.constant 0 : index
    %32 = vector.load %arg1[%c64, %c0_9] : memref<128x128xf32, #tpu.memory_space<vmem>>, vector<16x128xf32>
    %33 = vector.extract_strided_slice %1 {offsets = [4, 0], sizes = [1, 128], strides = [1, 1]} : vector<8x128xf32> to vector<1x128xf32>
    %34 = vector.broadcast %33 : vector<1x128xf32> to vector<16x128xf32>
    %35 = arith.mulf %32, %34 : vector<16x128xf32>
    %36 = arith.addf %29, %35 : vector<16x128xf32>
    %37 = arith.mulf %32, %32 : vector<16x128xf32>
    %38 = arith.addf %31, %37 : vector<16x128xf32>
    %c80 = arith.constant 80 : index
    %c0_10 = arith.constant 0 : index
    %39 = vector.load %arg1[%c80, %c0_10] : memref<128x128xf32, #tpu.memory_space<vmem>>, vector<16x128xf32>
    %40 = vector.extract_strided_slice %1 {offsets = [5, 0], sizes = [1, 128], strides = [1, 1]} : vector<8x128xf32> to vector<1x128xf32>
    %41 = vector.broadcast %40 : vector<1x128xf32> to vector<16x128xf32>
    %42 = arith.mulf %39, %41 : vector<16x128xf32>
    %43 = arith.addf %36, %42 : vector<16x128xf32>
    %44 = arith.mulf %39, %39 : vector<16x128xf32>
    %45 = arith.addf %38, %44 : vector<16x128xf32>
    %c96 = arith.constant 96 : index
    %c0_11 = arith.constant 0 : index
    %46 = vector.load %arg1[%c96, %c0_11] : memref<128x128xf32, #tpu.memory_space<vmem>>, vector<16x128xf32>
    %47 = vector.extract_strided_slice %1 {offsets = [6, 0], sizes = [1, 128], strides = [1, 1]} : vector<8x128xf32> to vector<1x128xf32>
    %48 = vector.broadcast %47 : vector<1x128xf32> to vector<16x128xf32>
    %49 = arith.mulf %46, %48 : vector<16x128xf32>
    %50 = arith.addf %43, %49 : vector<16x128xf32>
    %51 = arith.mulf %46, %46 : vector<16x128xf32>
    %52 = arith.addf %45, %51 : vector<16x128xf32>
    %c112 = arith.constant 112 : index
    %c0_12 = arith.constant 0 : index
    %53 = vector.load %arg1[%c112, %c0_12] : memref<128x128xf32, #tpu.memory_space<vmem>>, vector<16x128xf32>
    %54 = vector.extract_strided_slice %1 {offsets = [7, 0], sizes = [1, 128], strides = [1, 1]} : vector<8x128xf32> to vector<1x128xf32>
    %55 = vector.broadcast %54 : vector<1x128xf32> to vector<16x128xf32>
    %56 = arith.mulf %53, %55 : vector<16x128xf32>
    %57 = arith.addf %50, %56 : vector<16x128xf32>
    %58 = arith.mulf %53, %53 : vector<16x128xf32>
    %59 = arith.addf %52, %58 : vector<16x128xf32>
    %cst_13 = arith.constant dense<0.000000e+00> : vector<128xf32>
    %60 = vector.multi_reduction <add>, %59, %cst_13 [0] : vector<16x128xf32> to vector<128xf32>
    %61 = vector.shape_cast %60 : vector<128xf32> to vector<1x128xf32>
    %62 = arith.subf %0, %57 : vector<16x128xf32>
    %c0_14 = arith.constant 0 : index
    %c0_15 = arith.constant 0 : index
    %63 = vector.load %arg6[%c0_14, %c0_15] : memref<8x16xf32, #tpu.memory_space<vmem>>, vector<8x16xf32>
    %cst_16 = arith.constant dense<0.000000e+00> : vector<8x128xf32>
    %64 = tpu.matmul %63, %62, %cst_16 {dimension_numbers = #tpu.dot_dimension_numbers<[1], [0], [0], [1], [0, 0, 1, 1], [], []>} : vector<8x16xf32>, vector<16x128xf32>, vector<8x128xf32> -> vector<8x128xf32>
    %65 = arith.addf %1, %64 : vector<8x128xf32>
    %66 = arith.mulf %62, %62 : vector<16x128xf32>
    %cst_17 = arith.constant dense<0.000000e+00> : vector<128xf32>
    %67 = vector.multi_reduction <add>, %66, %cst_17 [0] : vector<16x128xf32> to vector<128xf32>
    %68 = vector.shape_cast %67 : vector<128xf32> to vector<1x128xf32>
    %c0_18 = arith.constant 0 : index
    %c0_19 = arith.constant 0 : index
    %69 = vector.load %arg4[%c0_18, %c0_19] : memref<1x128xf32, #tpu.memory_space<vmem>>, vector<1x128xf32>
    %70 = arith.subf %68, %69 : vector<1x128xf32>
    %71 = arith.divf %70, %61 : vector<1x128xf32>
    %cst_20 = arith.constant 9.99999971E-10 : f32
    %72 = vector.broadcast %cst_20 : f32 to vector<1x128xf32>
    %73 = arith.maximumf %71, %72 : vector<1x128xf32>
    %c0_21 = arith.constant 0 : index
    %c0_22 = arith.constant 0 : index
    %74 = vector.load %arg1[%c0_21, %c0_22] : memref<128x128xf32, #tpu.memory_space<vmem>>, vector<128x128xf32>
    %c0_23 = arith.constant 0 : index
    %c0_24 = arith.constant 0 : index
    %75 = vector.load %arg7[%c0_23, %c0_24] : memref<1x128xf32, #tpu.memory_space<vmem>>, vector<1x128xf32>
    %cst_25 = arith.constant dense<0.000000e+00> : vector<1x128xf32>
    %76 = tpu.matmul %75, %74, %cst_25 {dimension_numbers = #tpu.dot_dimension_numbers<[1], [0], [0], [1], [0, 0, 1, 1], [], []>} : vector<1x128xf32>, vector<128x128xf32>, vector<1x128xf32> -> vector<1x128xf32>
    %c0_26 = arith.constant 0 : index
    %c0_27 = arith.constant 0 : index
    %77 = vector.load %arg8[%c0_26, %c0_27] : memref<64x128xf32, #tpu.memory_space<vmem>>, vector<64x128xf32>
    %cst_28 = arith.constant dense<0.000000e+00> : vector<64x128xf32>
    %78 = tpu.matmul %77, %74, %cst_28 {dimension_numbers = #tpu.dot_dimension_numbers<[1], [0], [0], [1], [0, 0, 1, 1], [], []>} : vector<64x128xf32>, vector<128x128xf32>, vector<64x128xf32> -> vector<64x128xf32>
    %79 = arith.mulf %78, %78 : vector<64x128xf32>
    %cst_29 = arith.constant dense<0.000000e+00> : vector<128xf32>
    %80 = vector.multi_reduction <add>, %79, %cst_29 [0] : vector<64x128xf32> to vector<128xf32>
    %81 = vector.shape_cast %80 : vector<128xf32> to vector<1x128xf32>
    %cst_30 = arith.constant 2.000000e+00 : f32
    %82 = vector.broadcast %cst_30 : f32 to vector<1x128xf32>
    %83 = arith.mulf %82, %76 : vector<1x128xf32>
    %cst_31 = arith.constant 8.000000e+00 : f32
    %84 = vector.broadcast %cst_31 : f32 to vector<1x128xf32>
    %85 = arith.subf %84, %83 : vector<1x128xf32>
    %86 = arith.addf %85, %81 : vector<1x128xf32>
    %cst_32 = arith.constant 0.000000e+00 : f32
    %87 = vector.broadcast %cst_32 : f32 to vector<1x128xf32>
    %88 = arith.maximumf %86, %87 : vector<1x128xf32>
    %89 = arith.mulf %88, %73 : vector<1x128xf32>
    %cst_33 = arith.constant 1.250000e-01 : f32
    %90 = vector.broadcast %cst_33 : f32 to vector<1x128xf32>
    %91 = arith.mulf %89, %90 : vector<1x128xf32>
    %c0_34 = arith.constant 0 : index
    %c0_35 = arith.constant 0 : index
    %92 = vector.load %arg5[%c0_34, %c0_35] : memref<1x128xf32, #tpu.memory_space<vmem>>, vector<1x128xf32>
    %93 = arith.addf %91, %92 : vector<1x128xf32>
    %c0_36 = arith.constant 0 : index
    %c0_37 = arith.constant 0 : index
    %94 = vector.load %arg9[%c0_36, %c0_37] : memref<8x1xf32, #tpu.memory_space<vmem>>, vector<8x1xf32>
    %cst_38 = arith.constant 1.000000e+00 : f32
    %95 = vector.broadcast %cst_38 : f32 to vector<1x128xf32>
    %96 = arith.divf %95, %93 : vector<1x128xf32>
    %97 = vector.broadcast %94 : vector<8x1xf32> to vector<8x128xf32>
    %98 = vector.broadcast %96 : vector<1x128xf32> to vector<8x128xf32>
    %99 = arith.mulf %97, %98 : vector<8x128xf32>
    %cst_39 = arith.constant -0.948683261 : f32
    %100 = vector.broadcast %cst_39 : f32 to vector<8x128xf32>
    %101 = arith.subf %65, %100 : vector<8x128xf32>
    %102 = arith.mulf %101, %101 : vector<8x128xf32>
    %103 = arith.mulf %102, %99 : vector<8x128xf32>
    %cst_40 = arith.constant -0.316227764 : f32
    %104 = vector.broadcast %cst_40 : f32 to vector<8x128xf32>
    %105 = arith.subf %65, %104 : vector<8x128xf32>
    %106 = arith.mulf %105, %105 : vector<8x128xf32>
    %107 = arith.mulf %106, %99 : vector<8x128xf32>
    %cst_41 = arith.constant 0.316227764 : f32
    %108 = vector.broadcast %cst_41 : f32 to vector<8x128xf32>
    %109 = arith.subf %65, %108 : vector<8x128xf32>
    %110 = arith.mulf %109, %109 : vector<8x128xf32>
    %111 = arith.mulf %110, %99 : vector<8x128xf32>
    %cst_42 = arith.constant 0.948683261 : f32
    %112 = vector.broadcast %cst_42 : f32 to vector<8x128xf32>
    %113 = arith.subf %65, %112 : vector<8x128xf32>
    %114 = arith.mulf %113, %113 : vector<8x128xf32>
    %115 = arith.mulf %114, %99 : vector<8x128xf32>
    %116 = arith.maximumf %103, %107 : vector<8x128xf32>
    %117 = arith.maximumf %116, %111 : vector<8x128xf32>
    %118 = arith.maximumf %117, %115 : vector<8x128xf32>
    %cst_43 = arith.constant 0.000000e+00 : f32
    %119 = vector.broadcast %cst_43 : f32 to vector<8x128xf32>
    %cst_44 = arith.constant 0.000000e+00 : f32
    %120 = vector.broadcast %cst_44 : f32 to vector<8x128xf32>
    %121 = arith.subf %103, %118 : vector<8x128xf32>
    %122 = math.exp %121 : vector<8x128xf32>
    %123 = arith.addf %119, %122 : vector<8x128xf32>
    %cst_45 = arith.constant -0.948683261 : f32
    %124 = vector.broadcast %cst_45 : f32 to vector<8x128xf32>
    %125 = arith.mulf %122, %124 : vector<8x128xf32>
    %126 = arith.addf %120, %125 : vector<8x128xf32>
    %127 = arith.subf %107, %118 : vector<8x128xf32>
    %128 = math.exp %127 : vector<8x128xf32>
    %129 = arith.addf %123, %128 : vector<8x128xf32>
    %cst_46 = arith.constant -0.316227764 : f32
    %130 = vector.broadcast %cst_46 : f32 to vector<8x128xf32>
    %131 = arith.mulf %128, %130 : vector<8x128xf32>
    %132 = arith.addf %126, %131 : vector<8x128xf32>
    %133 = arith.subf %111, %118 : vector<8x128xf32>
    %134 = math.exp %133 : vector<8x128xf32>
    %135 = arith.addf %129, %134 : vector<8x128xf32>
    %cst_47 = arith.constant 0.316227764 : f32
    %136 = vector.broadcast %cst_47 : f32 to vector<8x128xf32>
    %137 = arith.mulf %134, %136 : vector<8x128xf32>
    %138 = arith.addf %132, %137 : vector<8x128xf32>
    %139 = arith.subf %115, %118 : vector<8x128xf32>
    %140 = math.exp %139 : vector<8x128xf32>
    %141 = arith.addf %135, %140 : vector<8x128xf32>
    %cst_48 = arith.constant 0.948683261 : f32
    %142 = vector.broadcast %cst_48 : f32 to vector<8x128xf32>
    %143 = arith.mulf %140, %142 : vector<8x128xf32>
    %144 = arith.addf %138, %143 : vector<8x128xf32>
    %145 = arith.divf %144, %141 : vector<8x128xf32>
    %c0_49 = arith.constant 0 : index
    %c0_50 = arith.constant 0 : index
    %146 = vector.load %arg10[%c0_49, %c0_50] : memref<8x128xf32, #tpu.memory_space<vmem>>, vector<8x128xf32>
    tpu.vector_store %arg10[%c0_49, %c0_50], %145 {strides = array<i32>} : memref<8x128xf32, #tpu.memory_space<vmem>>, vector<8x128xf32>,
    return
  }
  func.func @transform_0(%arg0: i32) -> (i32, i32) {
    %c0_i32 = arith.constant 0 : i32
    %c0_i32_0 = arith.constant 0 : i32
    return %c0_i32, %arg0 : i32, i32
  }
  func.func @transform_1(%arg0: i32) -> (i32, i32) {
    %c0_i32 = arith.constant 0 : i32
    %c0_i32_0 = arith.constant 0 : i32
    return %c0_i32, %arg0 : i32, i32
  }
  func.func @transform_2(%arg0: i32) -> (i32, i32) {
    %c0_i32 = arith.constant 0 : i32
    %c0_i32_0 = arith.constant 0 : i32
    return %c0_i32, %arg0 : i32, i32
  }
  func.func @transform_3(%arg0: i32) -> (i32, i32) {
    %c0_i32 = arith.constant 0 : i32
    %c0_i32_0 = arith.constant 0 : i32
    return %c0_i32, %arg0 : i32, i32
  }
  func.func @transform_4(%arg0: i32) -> (i32, i32) {
    %c0_i32 = arith.constant 0 : i32
    %c0_i32_0 = arith.constant 0 : i32
    return %c0_i32, %arg0 : i32, i32
  }
  func.func @transform_5(%arg0: i32) -> (i32, i32) {
    %c0_i32 = arith.constant 0 : i32
    %c0_i32_0 = arith.constant 0 : i32
    %c0_i32_1 = arith.constant 0 : i32
    return %c0_i32, %c0_i32_0 : i32, i32
  }
  func.func @transform_6(%arg0: i32) -> (i32, i32) {
    %c0_i32 = arith.constant 0 : i32
    %c0_i32_0 = arith.constant 0 : i32
    %c0_i32_1 = arith.constant 0 : i32
    return %c0_i32, %c0_i32_0 : i32, i32
  }
  func.func @transform_7(%arg0: i32) -> (i32, i32) {
    %c0_i32 = arith.constant 0 : i32
    %c0_i32_0 = arith.constant 0 : i32
    %c0_i32_1 = arith.constant 0 : i32
    return %c0_i32, %c0_i32_0 : i32, i32
  }
  func.func @transform_8(%arg0: i32) -> (i32, i32) {
    %c0_i32 = arith.constant 0 : i32
    %c0_i32_0 = arith.constant 0 : i32
    %c0_i32_1 = arith.constant 0 : i32
    return %c0_i32, %c0_i32_0 : i32, i32
  }
  func.func @transform_9(%arg0: i32) -> (i32, i32) {
    %c0_i32 = arith.constant 0 : i32
    %c0_i32_0 = arith.constant 0 : i32
    return %c0_i32, %arg0 : i32, i32
  }
}

</mosaic_0001>

<bundles_post_ra>
// kernel: tpu_custom_call.1
= control target key start
LH: loop header
LB: loop body
LE: loop exit
PB: predicated region body
PF: predicated region fallthrough
CT: control target
= control target key end

     0   :  { %s2177_s0 = inlined_call_operand.hbm [shape: f32[128,256], index: 0, kind: input, shape index: {}]   ;;  %s2178_s1 = inlined_call_operand.hbm [shape: f32[16,256], index: 1, kind: input, shape index: {}]   ;;  %s2179_s2 = inlined_call_operand.vmem [shape: f32[8,256], index: 2, kind: input, shape index: {}]   ;;  %s2180_s3 = inlined_call_operand.hbm [shape: f32[1,256], index: 3, kind: input, shape index: {}]   ;;  %s2181_s4 = inlined_call_operand.hbm [shape: f32[1,256], index: 4, kind: input, shape index: {}]   ;;  %s2182_s5 = inlined_call_operand.vmem [shape: f32[8,16], index: 5, kind: input, shape index: {}]   ;;  %s2183_s6 = inlined_call_operand.vmem [shape: f32[1,128], index: 6, kind: input, shape index: {}]   ;;  %s2184_s7 = inlined_call_operand.hbm [shape: f32[64,128], index: 7, kind: input, shape index: {}]   ;;  %s2185_s8 = inlined_call_operand.vmem [shape: f32[8,1], index: 8, kind: input, shape index: {}]   ;;  %s2186_s9 = inlined_call_operand.hbm [shape: f32[8,256], index: 9, kind: output, shape index: {}]  }
   0x1   :  { %2206 = sst [smem:[#allocation23_spill]] %s2178_s1 }
   0x2   :  { %2207 = sst [smem:[#allocation24_spill]] %s2184_s7 }
   0x3   :  { %2208 = sst [smem:[#allocation25_spill]] %s2186_s9 }
   0x4   :  { %14 = vsyncpa [#allocation3], 0 }
   0x5   :  { %16 = vsyncpa [#allocation3 + $0x1], 0 }
   0x6   :  { %17 = vsyncpa [#allocation6], 0 }
   0x7   :  { %19 = vsyncpa [#allocation6 + $0x1], 0 }
   0x8   :  { %20 = vsyncpa [#allocation9], 0 }
   0x9   :  { %22 = vsyncpa [#allocation9 + $0x1], 0 }
   0xa   :  { %23 = vsyncpa [#allocation4], 0 }
   0xb   :  { %25 = vsyncpa [#allocation4 + $0x1], 0  ;;  %s1745_s30 = smov 0   ;;  %s1747_s10 = smov 0  }
   0xc   :  { %s1749_s11 = smov 0   ;;  %s1751_s12 = smov 0  }
   0xd LB: > { %2209 = sst [smem:[#allocation17_spill]] %s1668_s30  ;;  %s1766_s13 = sadd.s32 4294967295, %s1680_s12   ;;  %s1680_s12 = sphi %s1751_s12, %s2244_s12   ;;  %s1676_s11 = sphi %s1749_s11, %s2249_s11   ;;  %s1672_s10 = sphi %s1747_s10, %s2248_s10   ;;  %s1668_s30 = sphi %s1745_s30, %s2247_s30  }
   0xe   : > { %2210 = sst [smem:[#allocation18_spill]] %s1676_s11  ;;  %s1146_s14 = sadd.s32 4294967294, %s1680_s12  }
   0xf   : > { %s1770_s15 = sadd.s32 1, %s1680_s12   ;;  %s38_s16 = sadd.s32 1, %s1676_s11 }
  0x10   : > { %2211 = sst [smem:[#allocation19_spill]] %s1770_s15  ;;  %s35_s17 = ssub.s32 %s1680_s12, %s1770_s15 }
  0x11   : > { %p45_p0 = scmp.ne.s32.totalorder %s1676_s11, %s1672_s10  ;;  %p36_p1 = scmp.eq.s32.totalorder %s35_s17, 0 }
  0x12   : > { %p46_p2 = scmp.eq.s32.totalorder %s1680_s12, 0  ;;  %p51_p3 = scmp.ne.s32.totalorder %s1672_s10, %s1668_s30 }
  0x13   : > { %p2190_p4 = scmp.eq.s32.totalorder %s1766_s13, 0  ;;  %p263_p7 = scmp.eq.s32.totalorder %s1766_s13, 1 }
  0x14   : > { %s1782_s18 = scalar_select %p36_p1, %s1676_s11, %s38_s16  }
  0x15   : > { %p1784_p5 = por %p46_p2, %p45_p0  ;;  %p1790_p6 = por %p2190_p4, %p51_p3 }
  0x16   : > { %2212 = sst [smem:[#allocation20_spill]] %s1782_s18  ;;  %p269_p8 = scmp.eq.s32.totalorder %s1146_s14, 1 }
  0x17   : > { %s2213_s19 = scalar_select %p1784_p5, 1, 0 }
  0x18   : > { %s2214_s20 = scalar_select %p1790_p6, 1, 0 }
  0x19   : > { %p1147_p9 = scmp.ge.s32.totalorder %s1680_s12, 1  ;;  %p276_p10 = scmp.lt.s32.totalorder %s1680_s12, 3 }
  0x1a   : > { %p1797_p11 = por %p263_p7, %p45_p0  ;;  %p1801_p12 = por %p269_p8, %p51_p3 }
  0x1b   : > { %p1805_p13 = pnand %p1147_p9, %p276_p10  ;;  %s1682_s24 = smov [#allocation10]  }
  0x1c   : > { %s2215_s21 = scalar_select %p1797_p11, 1, 0 }
  0x1d   : > { %s2217_s22 = scalar_select %p1801_p12, 1, 0 }
  0x1e   : > { %2216 = sst [smem:[#allocation21_spill]] %s2215_s21  ;;  %p1374_p1 = pneg %p1805_p13 }
  0x1f   : > { %2218 = sst [smem:[#allocation22_spill]] %s2217_s22  ;;  %s294_s25 = sshll.u32 %s1682_s24, 4  ;;  %s295_s25 = int_to_ptr.vmem [resolvable:$true] %s294_s25 }
  0x20   : > { %s2219_s23 = scalar_select %p1805_p13, 1, 0 }
  0x21   : > { %p1813_p2 = pnand %p1374_p1, %p2190_p4  ;;  %s1820_s27 = sand.u32 1, %s1676_s11  }
  0x22   : > { %s1151_s28 = sshll.u32 %s1680_s12, 7  ;;  %s2221_s7 = sld [smem:[#allocation24_spill]] }
  0x23   : > { %p1456_p8 = pneg %p1813_p2 }
  0x28   : > { %s1454_s16 = scalar_lea.hbm %s2221_s7, 1024 }
  0x29   : > { %p1455_p7 = scmp.ne.s32.totalorder %s2221_s7, %s1454_s16  ;;  %p1461_p1 = scmp.lt.u32.totalorder %s1454_s16, %s2221_s7 }
  0x2b   : > { %p1457_p9 = pnand %p1456_p8, %p1455_p7 }
  0x2d   : > { %p1458_p10 = pneg %p1457_p9 }
  0x2f   : > { %p1463_p0 = pnand %p1461_p1, %p1458_p10 }
  0x31   : > { %1466 = shalt.err (!%p1463_p0)
}
  0x32   : > { %s1467_s11 = scalar_lea.vmem %s295_s25, 1024  ;;  %p1475_p11 = scmp.lt.s32.totalorder %s295_s25, %s295_s25 }
  0x33   : > { %p1468_p4 = scmp.ne.s32.totalorder %s295_s25, %s1467_s11  ;;  %p1476_p6 = scmp.lt.s32.totalorder %s1467_s11, %s1467_s11 }
  0x35   : > { %p1470_p3 = pnand %p1468_p4, %p1456_p8  ;;  %p1477_p13 = por %p1476_p6, %p1475_p11 }
  0x37   : > { %p1471_p12 = pneg %p1470_p3 }
  0x39   : > { %p1478_p5 = pnand %p1477_p13, %p1471_p12 }
  0x3b   : > { %1481 = shalt.err (!%p1478_p5)
}
  0x3c   : > { %s2195_s18 = smov 128   ;;  %s2197_s15 = smov 8  }
  0x3d   : > { %1377 = dma.hbm_to_vmem [thread:$0]  (!%p1813_p2), %s2221_s7, 1024, %s295_s25, [#allocation9], %s2195_s18, %s2195_s18, %s2197_s15  }
  0x3e   : > { %p2222_p4 = scmp.ne.s32.totalorder %s2213_s19, 0  ;;  %p2223_p5 = scmp.lt.s32.totalorder %s1680_s12, 2 }
  0x3f   : > { %s2199_s16 = sand.u32 1, %s1680_s12   ;;  %s1152_s17 = sshll.u32 %s1820_s27, 4 }
  0x40   : > { %p1846_p6 = pnand %p2223_p5, %p2222_p4  ;;  %s2225_s1 = sld [smem:[#allocation23_spill]] }
  0x41   : > { %s335_s25 = scalar_lea.vmem [#allocation5], %s1152_s17  ;;  %s1864_s14 = scalar_lea.sflag [#allocation6], %s2199_s16 }
  0x42   : > { %s2224_s11 = scalar_select %p1846_p6, 1, 0 }
  0x43   : > { %s341_s19 = sshll.u32 %s335_s25, 4  ;;  %p1870_p12 = pneg %p1846_p6  ;;  %s1859_s19 = int_to_ptr.vmem [resolvable:$true] %s341_s19 }
  0x46   : > { %s1857_s26 = scalar_lea.hbm %s2225_s1, %s1151_s28  ;;  %s1487_s24 = scalar_lea.hbm %s2225_s1, 512 }
  0x47   : > { %s1482_s18 = scalar_lea.hbm %s1857_s26, 256  ;;  %p1488_p0 = scmp.lt.u32.totalorder %s1857_s26, %s2225_s1 }
  0x48   : > { %p1483_p11 = scmp.ne.s32.totalorder %s1857_s26, %s1482_s18  ;;  %p1489_p3 = scmp.lt.u32.totalorder %s1487_s24, %s1482_s18 }
  0x49   : > { %p1491_p8 = scmp.lt.u32.totalorder %s1482_s18, %s1857_s26 }
  0x4a   : > { %p1485_p13 = pnand %p1870_p12, %p1483_p11  ;;  %p1490_p7 = por %p1489_p3, %p1488_p0 }
  0x4c   : > { %p1486_p2 = pneg %p1485_p13  ;;  %p1492_p9 = por %p1491_p8, %p1490_p7 }
  0x4e   : > { %p1493_p10 = pnand %p1492_p9, %p1486_p2 }
  0x50   : > { %1496 = shalt.err (!%p1493_p10)
}
  0x51   : > { %s1497_s16 = scalar_lea.vmem %s1859_s19, 256  ;;  %s1685_s22 = smov [#allocation5]  }
  0x52   : > { %p1498_p1 = scmp.ne.s32.totalorder %s1859_s19, %s1497_s16  ;;  %s1502_s17 = sshll.u32 %s1685_s22, 4  ;;  %s1503_s17 = int_to_ptr.vmem [resolvable:$false] %s1502_s17 }
  0x53   : > { %s1504_s29 = scalar_lea.vmem %s1503_s17, 512  ;;  %p1505_p11 = scmp.lt.s32.totalorder %s1859_s19, %s1503_s17 }
  0x54   : > { %p1500_p4 = pnand %p1498_p1, %p1870_p12  ;;  %p1506_p13 = scmp.lt.s32.totalorder %s1504_s29, %s1497_s16 }
  0x56   : > { %p1501_p5 = pneg %p1500_p4  ;;  %p1507_p0 = por %p1506_p13, %p1505_p11 }
  0x58   : > { %p1508_p3 = pnand %p1507_p0, %p1501_p5 }
  0x5a   : > { %1511 = shalt.err (!%p1508_p3)
}
  0x5b   : > { %s1686_s18 = smov 256   ;;  %s2227_s24 = smov 8  }
  0x5c   : > { %s2228_s25 = smov 128   ;;  %s1902_s17 = scalar_lea.hbm %s2177_s0, %s1151_s28 }
  0x5d   : > { %1384 = dma.hbm_to_vmem [thread:$0]  (!%p1846_p6), %s1857_s26, 256, %s1859_s19, %s1864_s14, %s1686_s18, %s2228_s25, %s2227_s24  }
  0x5e   : > { %s2229_s29 = sshll.u32 %s1820_s27, 7  ;;  %s1154_s30 = sshll.u32 %s1680_s12, 4 }
  0x5f   : > { %s315_s1 = scalar_lea.vmem [#allocation2], %s2229_s29  ;;  %s312_s9 = scalar_lea.sflag [#allocation3], %s1820_s27 }
  0x60   : > { %s321_s7 = sshll.u32 %s315_s1, 4  ;;  %s1512_s21 = scalar_lea.hbm %s1902_s17, 2048  ;;  %s1906_s7 = int_to_ptr.vmem [resolvable:$true] %s321_s7 }
  0x61   : > { %p1513_p2 = scmp.ne.s32.totalorder %s1902_s17, %s1512_s21  ;;  %s1517_s28 = scalar_lea.hbm %s2177_s0, 4096 }
  0x62   : > { %p1518_p9 = scmp.lt.u32.totalorder %s1902_s17, %s2177_s0  ;;  %p1519_p10 = scmp.lt.u32.totalorder %s1517_s28, %s1512_s21 }
  0x63   : > { %p1515_p7 = pnand %p1513_p2, %p1870_p12  ;;  %p1521_p4 = scmp.lt.u32.totalorder %s1512_s21, %s1902_s17 }
  0x64   : > { %p1520_p1 = por %p1519_p10, %p1518_p9 }
  0x65   : > { %p1516_p8 = pneg %p1515_p7 }
  0x66   : > { %p1522_p5 = por %p1521_p4, %p1520_p1 }
  0x68   : > { %p1523_p11 = pnand %p1522_p5, %p1516_p8 }
  0x6a   : > { %1526 = shalt.err (!%p1523_p11)
}
  0x6b   : > { %s1527_s1 = scalar_lea.vmem %s1906_s7, 2048  ;;  %s1687_s29 = smov [#allocation2]  }
  0x6c   : > { %p1528_p13 = scmp.ne.s32.totalorder %s1906_s7, %s1527_s1  ;;  %s1532_s26 = sshll.u32 %s1687_s29, 4  ;;  %s1533_s26 = int_to_ptr.vmem [resolvable:$false] %s1532_s26 }
  0x6d   : > { %s1534_s19 = scalar_lea.vmem %s1533_s26, 4096  ;;  %p1535_p2 = scmp.lt.s32.totalorder %s1906_s7, %s1533_s26 }
  0x6e   : > { %p1530_p0 = pnand %p1528_p13, %p1870_p12  ;;  %p1536_p7 = scmp.lt.s32.totalorder %s1534_s19, %s1527_s1 }
  0x70   : > { %p1531_p3 = pneg %p1530_p0  ;;  %p1537_p9 = por %p1536_p7, %p1535_p2 }
  0x72   : > { %p1538_p10 = pnand %p1537_p9, %p1531_p3 }
  0x74   : > { %1541 = shalt.err (!%p1538_p10)
}
  0x75   : > { %1381 = dma.hbm_to_vmem [thread:$0]  (!%p1846_p6), %s1902_s17, 2048, %s1906_s7, %s312_s9, %s1686_s18, %s2228_s25, %s2227_s24  }
  0x76   : > { %s1941_s16 = scalar_lea.hbm %s2180_s3, %s1154_s30  ;;  %s361_s22 = scalar_lea.vmem [#allocation7], %s1820_s27 }
  0x77   : > { %s368_s1 = sshll.u32 %s361_s22, 4  ;;  %s1542_s29 = scalar_lea.hbm %s1941_s16, 16  ;;  %s369_s1 = int_to_ptr.vmem [resolvable:$true] %s368_s1 }
  0x78   : > { %p1543_p8 = scmp.ne.s32.totalorder %s1941_s16, %s1542_s29  ;;  %s1547_s9 = scalar_lea.hbm %s2180_s3, 32 }
  0x79   : > { %p1548_p5 = scmp.lt.u32.totalorder %s1941_s16, %s2180_s3  ;;  %p1549_p11 = scmp.lt.u32.totalorder %s1547_s9, %s1542_s29 }
  0x7a   : > { %p1545_p1 = pnand %p1543_p8, %p1870_p12  ;;  %p1551_p0 = scmp.lt.u32.totalorder %s1542_s29, %s1941_s16 }
  0x7b   : > { %p1550_p13 = por %p1549_p11, %p1548_p5 }
  0x7c   : > { %p1546_p4 = pneg %p1545_p1 }
  0x7d   : > { %p1552_p3 = por %p1551_p0, %p1550_p13 }
  0x7f   : > { %p1553_p2 = pnand %p1552_p3, %p1546_p4 }
  0x81   : > { %1556 = shalt.err (!%p1553_p2)
}
  0x82   : > { %s1557_s25 = scalar_lea.vmem %s369_s1, 16  ;;  %s1688_s17 = smov [#allocation7]  }
  0x83   : > { %p1558_p7 = scmp.ne.s32.totalorder %s369_s1, %s1557_s25  ;;  %s1562_s19 = sshll.u32 %s1688_s17, 4  ;;  %s1563_s19 = int_to_ptr.vmem [resolvable:$false] %s1562_s19 }
  0x84   : > { %s1564_s21 = scalar_lea.vmem %s1563_s19, 32  ;;  %p1565_p8 = scmp.lt.s32.totalorder %s369_s1, %s1563_s19 }
  0x85   : > { %p1560_p9 = pnand %p1558_p7, %p1870_p12  ;;  %p1566_p1 = scmp.lt.s32.totalorder %s1564_s21, %s1557_s25 }
  0x87   : > { %p1561_p10 = pneg %p1560_p9  ;;  %p1567_p6 = por %p1566_p1, %p1565_p8 }
  0x89   : > { %p1568_p5 = pnand %p1567_p6, %p1561_p10 }
  0x8b   : > { %1571 = shalt.err (!%p1568_p5)
}
  0x8c   : > { %p2230_p11 = scmp.ne.s32.totalorder %s2224_s11, 0  ;;  %s1967_s29 = scalar_lea.hbm %s2181_s4, %s1154_s30 }
  0x8d   : > { %s378_s26 = scalar_lea.vmem [#allocation8], %s1820_s27  ;;  %s2231_s9 = sand.u32 1, %s1680_s12  }
  0x8e   : > { %1387 = dma.hbm_to_vmem [thread:$0]  (!%p2230_p11), %s1941_s16, 16, %s369_s1, %s1864_s14  }
  0x8f   : > { %s385_s7 = sshll.u32 %s378_s26, 4  ;;  %s376_s18 = scalar_lea.sflag [#allocation9], %s2231_s9  ;;  %s386_s7 = int_to_ptr.vmem [resolvable:$true] %s385_s7 }
  0x90   : > { %s1572_s24 = scalar_lea.hbm %s1967_s29, 16  ;;  %s1577_s1 = scalar_lea.hbm %s2181_s4, 32 }
  0x91   : > { %p1573_p6 = scmp.ne.s32.totalorder %s1967_s29, %s1572_s24  ;;  %p1578_p0 = scmp.lt.u32.totalorder %s1967_s29, %s2181_s4 }
  0x92   : > { %p1579_p3 = scmp.lt.u32.totalorder %s1577_s1, %s1572_s24  ;;  %p1581_p7 = scmp.lt.u32.totalorder %s1572_s24, %s1967_s29 }
  0x93   : > { %p1575_p4 = pnand %p1573_p6, %p1870_p12 }
  0x94   : > { %p1580_p2 = por %p1579_p3, %p1578_p0 }
  0x95   : > { %p1576_p13 = pneg %p1575_p4 }
  0x96   : > { %p1582_p9 = por %p1581_p7, %p1580_p2 }
  0x98   : > { %p1583_p10 = pnand %p1582_p9, %p1576_p13 }
  0x9a   : > { %1586 = shalt.err (!%p1583_p10)
}
  0x9b   : > { %s1587_s27 = scalar_lea.vmem %s386_s7, 16  ;;  %s1689_s17 = smov [#allocation8]  }
  0x9c   : > { %p1588_p8 = scmp.ne.s32.totalorder %s386_s7, %s1587_s27  ;;  %s1592_s19 = sshll.u32 %s1689_s17, 4  ;;  %s1593_s19 = int_to_ptr.vmem [resolvable:$false] %s1592_s19 }
  0x9d   : > { %s1594_s21 = scalar_lea.vmem %s1593_s19, 32  ;;  %p1595_p6 = scmp.lt.s32.totalorder %s386_s7, %s1593_s19 }
  0x9e   : > { %p1590_p1 = pnand %p1588_p8, %p1870_p12  ;;  %p1596_p4 = scmp.lt.s32.totalorder %s1594_s21, %s1587_s27 }
  0xa0   : > { %p1591_p5 = pneg %p1590_p1  ;;  %p1597_p11 = por %p1596_p4, %p1595_p6 }
  0xa2   : > { %p1598_p0 = pnand %p1597_p11, %p1591_p5 }
  0xa4   : > { %1601 = shalt.err (!%p1598_p0)
}
  0xa5   : > { %p2232_p3 = scmp.ne.s32.totalorder %s2224_s11, 0  ;;  %p2233_p13 = scmp.ne.s32.totalorder %s2219_s23, 0 }
  0xa6   : > { %s1992_s15 = sand.u32 (!%p2233_p13), 1, %s1672_s10   ;;  %p2234_p12 = scmp.ne.s32.totalorder (!%p2233_p13), %s2214_s20, 0 }
  0xa7   : > { %1390 = dma.hbm_to_vmem [thread:$0]  (!%p2232_p3), %s1967_s29, 16, %s386_s7, %s376_s18  }
  0xa8   : > { %394 = sbr.rel (%p2233_p13) target bundleno = 548 (0x224), region = 56  ;;  %s1157_s28 = sshll.u32 (!%p2233_p13), %s1992_s15, 7 }
  0xa9   : > { %s397_s22 = scalar_lea.sflag (!%p2233_p13), [#allocation3], %s1992_s15  ;;  %s1996_s26 = scalar_lea.vmem (!%p2233_p13), [#allocation2], %s1157_s28 }
  0xaf   : > { %1647 = dma.done.wait (%p2234_p12), %s397_s22, 2048  }
  0xb0   : > { %1649 = vsyncadd (%p2234_p12), %s397_s22, 4294965248  ;;  %s405_s23 = sand.u32 1, %s1766_s13   ;;  %s1158_s11 = sshll.u32 %s1992_s15, 4 }
  0xb1   : > { %s406_s29 = scalar_lea.sflag [#allocation6], %s405_s23  ;;  %s2004_s7 = scalar_lea.vmem [#allocation5], %s1158_s11 }
  0xb2   : > { %1651 = dma.done.wait (%p2234_p12), %s406_s29, 272  }
  0xb3   : > { %1653 = vsyncadd (%p2234_p12), %s406_s29, 4294967024  ;;  %s417_s9 = scalar_lea.vmem [#allocation7], %s1992_s15  ;;  %s423_s18 = scalar_lea.sflag [#allocation9], %s405_s23 }
  0xb4   : > { %s425_s24 = scalar_lea.vmem [#allocation8], %s1992_s15 }
  0xb5   : > { %1655 = dma.done.wait (%p2234_p12), %s423_s18, 16  }
  0xb6   : > { %1657 = vsyncadd (%p2234_p12), %s423_s18, 4294967280  ;;  %p2235_p11 = scmp.eq.s32.totalorder %s1766_s13, 0 }
  0xb8   : > { %1659 = dma.done.wait (%p2235_p11), [#allocation9], 1024   ;;  %p2236_p2 = pmov %p2235_p11 }
  0xb9   : > { %p481_p7 = scmp.lt.s32.totalorder %s1766_s13, 1  ;;  %v490_v0 = vlaneseq  ;;  %v1690_v1 = vmov 0.0|0.0   ;;  %vm1691_vm0 = vmmov 0   ;;  %v1692_v2 = vmov 0.0   ;;  %v699_v10 = vld [vmem:[%s1996_s26] sm:$0xff]  ;;  %v700_v11 = vld [vmem:[%s1996_s26 + $0x8] sm:$0xff] }
  0xba   : > { %1661 = vsyncadd (%p2236_p2), [#allocation9], 4294966272  ;;  %1301 = vmatprep.subr.bf16.mxu1 %v1690_v1  ;;  %1219 = vmatprep.mubr.msk.f32.mxu1 %vm1691_vm0, %v1692_v2  ;;  %v1693_v4 = vmov 0   ;;  %v701_v12 = vld [vmem:[%s1996_s26 + $0x10] sm:$0xff]  ;;  %v2038_v16 = vpack.c.bf16 %v700_v11, %v699_v10  ;;  %v702_v17 = vld [vmem:[%s1996_s26 + $0x18] sm:$0xff]  ;;  %v498_v20 = vmul.f32 %v699_v10, %v699_v10  ;;  %v499_v21 = vmul.f32 %v700_v11, %v700_v11  ;;  %s2237_s22 = sld [smem:[#allocation21_spill]] }
  0xbb   : > { %s482_s20 = scalar_select %p481_p7, %s1766_s13, 1  ;;  %v2025_v3 = vshrl.u32 %v490_v0, 7  ;;  %1439 = vset.pattern.permute.xlu0 %v1693_v4  ;;  %v703_v18 = vld [vmem:[%s1996_s26 + $0x20] sm:$0xff]  ;;  %v704_v19 = vld [vmem:[%s1996_s26 + $0x28] sm:$0xff]  ;;  %v512_v22 = vmul.f32 %v701_v12, %v701_v12  ;;  %v2046_v23 = vpack.c.bf16 %v702_v17, %v701_v12  ;;  %v705_v25 = vld [vmem:[%s1996_s26 + $0x30] sm:$0xff]  ;;  %v513_v28 = vmul.f32 %v702_v17, %v702_v17 }
  0xbc   : > { %v2048_v24 = vpack.c.bf16 %v704_v19, %v703_v18  ;;  %v706_v26 = vld [vmem:[%s1996_s26 + $0x38] sm:$0xff]  ;;  %v707_v27 = vld [vmem:[%s1996_s26 + $0x40] sm:$0xff]  ;;  %v526_v29 = vmul.f32 %v703_v18, %v703_v18  ;;  %1329 = vmatprep.subr.bf16.mxu0 %v2038_v16  ;;  %v708_v31 = vld [vmem:[%s1996_s26 + $0x48] sm:$0xff]  ;;  %v527_v35 = vmul.f32 %v704_v19, %v704_v19  ;;  %v540_v36 = vmul.f32 %v705_v25, %v705_v25  ;;  %s1168_s23 = sshll.u32 %s1766_s13, 7  ;;  %s2238_s18 = sld [smem:[#allocation25_spill]] }
  0xbd   : > { %s1161_s14 = sshll.u32 %s482_s20, 3  ;;  %v492_v5 = vsub.s32 0, %v2025_v3  ;;  %v506_v6 = vsub.s32 1, %v2025_v3  ;;  %v520_v7 = vsub.s32 2, %v2025_v3  ;;  %v534_v8 = vsub.s32 3, %v2025_v3  ;;  %v709_v32 = vld [vmem:[%s1996_s26 + $0x50] sm:$0xff]  ;;  %1331 = vmatpush3.bf16.msra.mxu0 %v2038_v16 }
  0xbe   : > { %v548_v9 = vsub.s32 4, %v2025_v3  ;;  %v562_v13 = vsub.s32 5, %v2025_v3  ;;  %v576_v14 = vsub.s32 6, %v2025_v3  ;;  %v590_v15 = vsub.s32 7, %v2025_v3  ;;  %s484_s30 = scalar_lea.vmem %s2179_s2, %s1161_s14  ;;  %v710_v33 = vld [vmem:[%s1996_s26 + $0x58] sm:$0xff]  ;;  %1333 = vmatprep.subr.bf16.mxu0 %v2046_v23  ;;  %v784_v50 = vld [vmem:[#allocation10] sm:$0xff] }
  0xbf   : > { %v2054_v30 = vpack.c.bf16 %v706_v26, %v705_v25  ;;  %v514_v34 = vadd.f32 %v512_v22, %v498_v20  ;;  %v2060_v37 = vpack.c.bf16 %v708_v31, %v707_v27  ;;  %v2062_v38 = vpack.c.bf16 %v710_v33, %v709_v32  ;;  %v2064_v39 = vld [vmem:[%s484_s30] sm:$0xff]  ;;  %1289 = vmatprep.mubr.f32.mxu0 %v784_v50  ;;  %s982_s20 = scalar_lea.sflag [#allocation4], %s1992_s15  ;;  %s1694_s13 = smov [#allocation11]  }
  0xc0   : > { %v515_v40 = vadd.f32 %v513_v28, %v499_v21  ;;  %v541_v41 = vmul.f32 %v706_v26, %v706_v26  ;;  %v493_v42 = vrot.slane %v2064_v39, %v492_v5  ;;  %v507_v43 = vrot.slane %v2064_v39, %v506_v6  ;;  %v926_v63 = vld [vmem:[%s2185_s8] sm:$0xff]  ;;  %v573_v21 = vld [vmem:[%s1996_s26 + $0x68] sm:$0xff]  ;;  %v587_v28 = vld [vmem:[%s1996_s26 + $0x78] sm:$0xff]  ;;  %p2239_p10 = scmp.ne.s32.totalorder %s2237_s22, 0  ;;  %s1606_s16 = sshll.u32 %s1694_s13, 4  ;;  %s1607_s16 = int_to_ptr.vmem [resolvable:$false] %s1606_s16 }
  0xc1   : > { %v521_v44 = vrot.slane %v2064_v39, %v520_v7  ;;  %v528_v45 = vadd.f32 %v526_v29, %v514_v34  ;;  %v535_v47 = vrot.slane %v2064_v39, %v534_v8  ;;  %v549_v48 = vrot.slane %v2064_v39, %v548_v9  ;;  %1335 = vmatpush3.bf16.msra.mxu0 %v2046_v23  ;;  %v572_v20 = vld [vmem:[%s1996_s26 + $0x60] sm:$0xff]  ;;  %s1608_s1 = scalar_lea.vmem %s1607_s16, 256 }
  0xc2   : > { %v529_v46 = vadd.f32 %v527_v35, %v515_v40  ;;  %v554_v49 = vmul.f32 %v707_v27, %v707_v27  ;;  %v494_v51 = vmul.f32 %v699_v10, %v493_v42  ;;  %v495_v52 = vmul.f32 %v700_v11, %v493_v42  ;;  %1337 = vmatprep.subr.bf16.mxu0 %v2048_v24 }
  0xc3   : > { %v508_v53 = vmul.f32 %v701_v12, %v507_v43  ;;  %v509_v54 = vmul.f32 %v702_v17, %v507_v43  ;;  %v522_v55 = vmul.f32 %v703_v18, %v521_v44  ;;  %v523_v56 = vmul.f32 %v704_v19, %v521_v44  ;;  %931 = vperm.xlu0 %1439, %v926_v63  }
  0xc4   : > { %v536_v57 = vmul.f32 %v705_v25, %v535_v47  ;;  %v537_v58 = vmul.f32 %v706_v26, %v535_v47  ;;  %v542_v61 = vadd.f32 %v540_v36, %v528_v45  ;;  %v543_v62 = vadd.f32 %v541_v41, %v529_v46 }
  0xc5   : > { %v510_v59 = vadd.f32 %v508_v53, %v494_v51  ;;  %v511_v60 = vadd.f32 %v509_v54, %v495_v52  ;;  %v550_v0 = vmul.f32 %v707_v27, %v549_v48  ;;  %v551_v4 = vmul.f32 %v708_v31, %v549_v48  ;;  %1339 = vmatpush3.bf16.msra.mxu0 %v2048_v24  ;;  %v586_v27 = vld [vmem:[%s1996_s26 + $0x70] sm:$0xff]  ;;  %v486_v52 = vld [vmem:[%s2004_s7 + $0x8] sm:$0xff]  ;;  %s1160_s26 = sshll.u32 %s1992_s15, 3 }
  0xc6   : > { %v555_v6 = vmul.f32 %v708_v31, %v708_v31  ;;  %v563_v7 = vrot.slane %v2064_v39, %v562_v13  ;;  %v556_v10 = vadd.f32 %v554_v49, %v542_v61  ;;  %v568_v11 = vmul.f32 %v709_v32, %v709_v32  ;;  %1341 = vmatprep.subr.bf16.mxu0 %v2054_v30  ;;  %v485_v51 = vld [vmem:[%s2004_s7] sm:$0xff]  ;;  %s480_s11 = scalar_lea.vmem [#allocation11], %s1160_s26 }
  0xc7   : > { %v524_v8 = vadd.f32 %v522_v55, %v510_v59  ;;  %v525_v9 = vadd.f32 %v523_v56, %v511_v60  ;;  %v569_v19 = vmul.f32 %v710_v33, %v710_v33  ;;  %v577_v26 = vrot.slane %v2064_v39, %v576_v14  ;;  %s995_s29 = sshll.u32 %s480_s11, 4  ;;  %s2135_s29 = int_to_ptr.vmem [resolvable:$true] %s995_s29 }
  0xc8   : > { %v557_v12 = vadd.f32 %v555_v6, %v543_v62  ;;  %v564_v17 = vmul.f32 %v709_v32, %v563_v7  ;;  %v565_v18 = vmul.f32 %v710_v33, %v563_v7  ;;  %v570_v13 = vadd.f32 %v568_v11, %v556_v10  ;;  %v786_v6 = vld [vmem:[#allocation10 + $0x10] sm:$0xff]  ;;  %v787_v7 = vld [vmem:[#allocation10 + $0x18] sm:$0xff]  ;;  %s1602_s14 = scalar_lea.vmem %s2135_s29, 128  ;;  %p1609_p5 = scmp.lt.s32.totalorder %s2135_s29, %s1607_s16 }
  0xc9   : > { %v538_v22 = vadd.f32 %v536_v57, %v524_v8  ;;  %v539_v25 = vadd.f32 %v537_v58, %v525_v9  ;;  %v582_v31 = vmul.f32 %v572_v20, %v572_v20  ;;  %v583_v34 = vmul.f32 %v573_v21, %v573_v21  ;;  %1343 = vmatpush3.bf16.msra.mxu0 %v2054_v30  ;;  %v788_v8 = vld [vmem:[#allocation10 + $0x20] sm:$0xff]  ;;  %p1603_p9 = scmp.ne.s32.totalorder %s2135_s29, %s1602_s14  ;;  %p1610_p6 = scmp.lt.s32.totalorder %s1608_s1, %s1602_s14 }
  0xca   : > { %v571_v29 = vadd.f32 %v569_v19, %v557_v12  ;;  %v591_v32 = vrot.slane %v2064_v39, %v590_v15  ;;  %v578_v36 = vmul.f32 %v577_v26, %v572_v20  ;;  %v579_v40 = vmul.f32 %v577_v26, %v573_v21  ;;  %1345 = vmatprep.subr.bf16.mxu0 %v2060_v37 }
  0xcb   : > { %v552_v33 = vadd.f32 %v550_v0, %v538_v22  ;;  %v553_v35 = vadd.f32 %v551_v4, %v539_v25  ;;  %v584_v41 = vadd.f32 %v582_v31, %v570_v13  ;;  %v596_v46 = vmul.f32 %v586_v27, %v586_v27  ;;  %v609_v0 = vld [vmem:[%s2182_s5] sm:$0xff]  ;;  %v785_v4 = vld [vmem:[#allocation10 + $0x8] sm:$0xff]  ;;  %p1604_p8 = pnand %p1603_p9, %p2239_p10  ;;  %p1611_p4 = por %p1610_p6, %p1609_p5 }
  0xcc   : > { %v585_v42 = vadd.f32 %v583_v34, %v571_v29  ;;  %v592_v14 = vmul.f32 %v591_v32, %v586_v27  ;;  %v593_v43 = vmul.f32 %v591_v32, %v587_v28  ;;  %v597_v47 = vmul.f32 %v587_v28, %v587_v28 }
  0xcd   : > { %v566_v44 = vadd.f32 %v564_v17, %v552_v33  ;;  %v567_v45 = vadd.f32 %v565_v18, %v553_v35  ;;  %v598_v49 = vadd.f32 %v596_v46, %v584_v41  ;;  %1347 = vmatpush3.bf16.msra.mxu0 %v2060_v37  ;;  %v1323_v56 = vpack.c.bf16 %v573_v21, %v572_v20  ;;  %v694_v21 = vld [vmem:[%s417_s9] sm:$0x1]  ;;  %p1605_p1 = pneg %p1604_p8 }
  0xce   : > { %v599_v50 = vadd.f32 %v597_v47, %v585_v42  ;;  %1349 = vmatprep.subr.bf16.mxu0 %v2062_v38  ;;  %v1326_v62 = vpack.c.bf16 %v587_v28, %v586_v27  ;;  %vm610_vm1 = vcmask 130048  }
  0xcf   : > { %v580_v48 = vadd.f32 %v578_v36, %v566_v44  ;;  %v581_v15 = vadd.f32 %v579_v40, %v567_v45  ;;  %p1612_p0 = pnand %p1611_p4, %p1605_p1 }
  0xd0   : > { %v600_v55 = vadd.f32 %v599_v50, %v598_v49 }
  0xd1   : > { %v594_v53 = vadd.f32 %v592_v14, %v580_v48  ;;  %v595_v54 = vadd.f32 %v593_v43, %v581_v15  ;;  %1351 = vmatpush3.bf16.msra.mxu0 %v2062_v38 }
  0xd2   : > { %1353 = vmatprep.subr.bf16.mxu0 %v1323_v56 }
  0xd3   : > { %v607_v57 = vsub.f32 %v485_v51, %v594_v53  ;;  %v608_v58 = vsub.f32 %v486_v52, %v595_v54 }
  0xd5   : > { %v1302_v59 = vpack.c.bf16 %v608_v58, %v607_v57  ;;  %v685_v60 = vmul.f32 %v607_v57, %v607_v57  ;;  %v686_v61 = vmul.f32 %v608_v58, %v608_v58  ;;  %1355 = vmatpush3.bf16.msra.mxu0 %v1323_v56 }
  0xd6   : > { %1357 = vmatprep.subr.bf16.mxu0 %v1326_v62 }
  0xd7   : > { %1303 = vmatpush3.bf16.msra.mxu1 %v1302_v59  ;;  %v687_v63 = vadd.f32 %v686_v61, %v685_v60 }
  0xd8   : > { %1304 = vmatprep.subr.bf16.mxu1 %v1690_v1 }
  0xd9   : > { %1359 = vmatpush3.bf16.msra.mxu0 %v1326_v62  ;;  %v688_v9 = vrot.slane %v687_v63, 4 }
  0xda   : > { %1220 = vmatmul.mubr.msk.f32.vlgmr.msra.gmra.mrb[0].mxu1 %vm610_vm1, %v609_v0 }
  0xdb   : > { %1306 = vmatpush3.bf16.msra.mxu1 %v2038_v16  ;;  %1254 = vmatprep.mubr.msk.f32.mxu1 %vm1691_vm0, %v1692_v2  ;;  %v789_v2 = vld [vmem:[#allocation10 + $0x28] sm:$0xff]  ;;  %v790_v16 = vld [vmem:[#allocation10 + $0x30] sm:$0xff]  ;;  %v689_v10 = vadd.f32 %v688_v9, %v687_v63 }
  0xdc   : > { %1307 = vmatprep.subr.bf16.mxu1 %v1690_v1  ;;  %1290 = vmatmul.mubr.f32.vlgmr.msra.gmra.mrb[0].mxu0 %v785_v4 }
  0xdd   : > { %1292 = vmatprep.mubr.f32.mxu0 %v786_v6  ;;  %v690_v12 = vrot.slane %v689_v10, 2 }
  0xdf   : > { %1309 = vmatpush3.bf16.msra.mxu1 %v2046_v23  ;;  %v791_v23 = vld [vmem:[#allocation10 + $0x38] sm:$0xff] }
  0xe0   : > { %1310 = vmatprep.subr.bf16.mxu1 %v1690_v1  ;;  %1293 = vmatmul.mubr.f32.gmra.mrb[2].mxu0 %v787_v7  ;;  %v924_v7 = vld [vmem:[%s425_s24] sm:$0x1]  ;;  %s2133_s24 = scalar_lea.hbm %s2238_s18, %s1168_s23 }
  0xe1   : > { %1295 = vmatprep.mubr.f32.mxu0 %v788_v8 }
  0xe3   : > { %1312 = vmatpush3.bf16.msra.mxu1 %v2048_v24  ;;  %v713_v24 = vld [vmem:[%s2183_s6] sm:$0x1] }
  0xe4   : > { %1313 = vmatprep.subr.bf16.mxu1 %v1690_v1  ;;  %1296 = vmatmul.mubr.f32.gmra.mrb[4].mxu0 %v789_v2 }
  0xe5   : > { %1298 = vmatprep.mubr.f32.mxu0 %v790_v16 }
  0xe7   : > { %1315 = vmatpush3.bf16.msra.mxu1 %v2054_v30  ;;  %v601_v30 = vrot.slane %v600_v55, 4 }
  0xe8   : > { %1316 = vmatprep.subr.bf16.mxu1 %v1690_v1  ;;  %1299 = vmatmul.mubr.f32.gmra.mrb[6].mxu0 %v791_v23 }
  0xeb   : > { %1318 = vmatpush3.bf16.msra.mxu1 %v2060_v37  ;;  %v602_v37 = vadd.f32 %v601_v30, %v600_v55 }
  0xec   : > { %1319 = vmatprep.subr.bf16.mxu1 %v1690_v1 }
  0xed   : > { %v603_v11 = vrot.slane %v602_v37, 2 }
  0xef   : > { %1321 = vmatpush3.bf16.msra.mxu1 %v2062_v38  ;;  %v604_v17 = vadd.f32 %v603_v11, %v602_v37  ;;  %v691_v38 = vadd.f32 %v690_v12, %v689_v10 }
  0xf0   : > { %1322 = vmatprep.subr.bf16.mxu1 %v1690_v1 }
  0xf1   : > { %v605_v18 = vrot.slane %v604_v17, 1  ;;  %v692_v20 = vrot.slane %v691_v38, 1 }
  0xf3   : > { %1324 = vmatpush3.bf16.msra.mxu1 %v1323_v56  ;;  %v606_v19 = vadd.f32 %v605_v18, %v604_v17 }
  0xf4   : > { %1325 = vmatprep.subr.bf16.mxu1 %v1690_v1  ;;  %v693_v1 = vadd.f32 %v692_v20, %v691_v38 }
  0xf5   : > { %1440 = vrcp.f32 %v606_v19 }
  0xf6   : > { %v695_v22 = vsub.f32 %v693_v1, %v694_v21 }
  0xf7   : > { %1327 = vmatpush3.bf16.msra.mxu1 %v1326_v62 }
  0xfa   : > { %1255 = vmatmul.mubr.f32.vlgmr.msra.gmra.mrb[2].mxu1 %v713_v24 }
  0xff   : > { %v1441_v25 = vpop.eup %1440 }
 0x100   : > { %v697_v13 = vmul.f32 %v1441_v25, %v695_v22 }
 0x102   : > { %v698_v63 = vmax.f32 %v697_v13, 1e-09 }
 0x142   : > { %v932_v10 = vpop.permute.xlu0 %931 }
 0x1ad   : > { %v680_v26 = vpop.f32.mrb[0].mxu1 }
 0x1ae   : > { %v1221_v27 = vpop.f32.mrb[1].mxu1  ;;  %v684_v16 = vadd.f32 %v680_v26, %v2064_v39 }
 0x1af   : > { %v1291_v28 = vpop.f32.mrb[0].mxu0 }
 0x1b0   : > { %v898_v29 = vmul.f32 %v1291_v28, %v1291_v28  ;;  %v858_v31 = vpop.f32.mrb[1].mxu0  ;;  %v1163_v23 = vadd.f32 0.94868326, %v684_v16  ;;  %v1164_v24 = vadd.f32 0.31622776, %v684_v16 }
 0x1b1   : > { %v897_v34 = vmul.f32 %v858_v31, %v858_v31  ;;  %v1165_v30 = vadd.f32 -0.31622776, %v684_v16  ;;  %v1166_v9 = vadd.f32 -0.94868326, %v684_v16 }
 0x1b2   : > { %v940_v12 = vmul.f32 %v1163_v23, %v1163_v23  ;;  %v943_v17 = vmul.f32 %v1164_v24, %v1164_v24 }
 0x1b3   : > { %v905_v32 = vadd.f32 %v898_v29, %v897_v34  ;;  %v1294_v33 = vpop.f32.mrb[2].mxu0  ;;  %v946_v38 = vmul.f32 %v1165_v30, %v1165_v30  ;;  %v949_v18 = vmul.f32 %v1166_v9, %v1166_v9 }
 0x1b4   : > { %v868_v35 = vpop.f32.mrb[3].mxu0  ;;  %v900_v40 = vmul.f32 %v1294_v33, %v1294_v33 }
 0x1b5   : > { %v899_v36 = vmul.f32 %v868_v35, %v868_v35 }
 0x1b7   : > { %v906_v41 = vadd.f32 %v905_v32, %v899_v36  ;;  %v1297_v42 = vpop.f32.mrb[4].mxu0 }
 0x1b8   : > { %v878_v14 = vpop.f32.mrb[5].mxu0  ;;  %v902_v45 = vmul.f32 %v1297_v42, %v1297_v42 }
 0x1b9   : > { %v901_v43 = vmul.f32 %v878_v14, %v878_v14  ;;  %v907_v44 = vadd.f32 %v906_v41, %v900_v40 }
 0x1bb   : > { %v908_v46 = vadd.f32 %v907_v44, %v901_v43  ;;  %v1300_v47 = vpop.f32.mrb[6].mxu0 }
 0x1bc   : > { %v888_v48 = vpop.f32.mrb[7].mxu0  ;;  %v904_v50 = vmul.f32 %v1300_v47, %v1300_v47 }
 0x1bd   : > { %v903_v15 = vmul.f32 %v888_v48, %v888_v48  ;;  %v909_v49 = vadd.f32 %v908_v46, %v902_v45 }
 0x1bf   : > { %v910_v51 = vadd.f32 %v909_v49, %v903_v15 }
 0x1c1   : > { %v911_v52 = vadd.f32 %v910_v51, %v904_v50 }
 0x1c3   : > { %v912_v53 = vrot.slane %v911_v52, 4 }
 0x1c5   : > { %v913_v54 = vadd.f32 %v912_v53, %v911_v52 }
 0x1c7   : > { %v914_v55 = vrot.slane %v913_v54, 2 }
 0x1c9   : > { %v915_v56 = vadd.f32 %v914_v55, %v913_v54 }
 0x1cb   : > { %v916_v58 = vrot.slane %v915_v56, 1 }
 0x1cd   : > { %v780_v57 = vpop.f32.mrb[2].mxu1  ;;  %v917_v61 = vadd.f32 %v916_v58, %v915_v56 }
 0x1ce   : > { %v918_v59 = vmul.f32 2.0, %v780_v57  ;;  %v1256_v60 = vpop.f32.mrb[3].mxu1 }
 0x1d0   : > { %v919_v62 = vsub.f32 8.0, %v918_v59 }
 0x1d2   : > { %v920_v0 = vadd.f32 %v919_v62, %v917_v61 }
 0x1d4   : > { %v921_v4 = vmax.f32 %v920_v0, 0.0 }
 0x1d6   : > { %v922_v6 = vmul.f32 %v921_v4, %v698_v63 }
 0x1d8   : > { %v923_v8 = vmul.f32 0.125, %v922_v6 }
 0x1da   : > { %v925_v2 = vadd.f32 %v924_v7, %v923_v8 }
 0x1dc   : > { %1442 = vrcp.f32 %v925_v2 }
 0x1e6   : > { %v1443_v37 = vpop.eup %1442 }
 0x1e7   : > { %v937_v11 = vrot.slane %v1443_v37, %v492_v5 }
 0x1e9   : > { %v938_v19 = vmul.f32 %v937_v11, %v932_v10 }
 0x1eb   : > { %v941_v20 = vmul.f32 %v940_v12, %v938_v19  ;;  %v944_v1 = vmul.f32 %v943_v17, %v938_v19  ;;  %v947_v21 = vmul.f32 %v946_v38, %v938_v19  ;;  %v950_v22 = vmul.f32 %v949_v18, %v938_v19 }
 0x1ed   : > { %v951_v25 = vmax.f32 %v941_v20, %v944_v1 }
 0x1ef   : > { %v952_v39 = vmax.f32 %v951_v25, %v947_v21 }
 0x1f1   : > { %v953_v13 = vmax.f32 %v952_v39, %v950_v22 }
 0x1f3   : > { %v954_v26 = vsub.f32 %v941_v20, %v953_v13  ;;  %v960_v27 = vsub.f32 %v944_v1, %v953_v13  ;;  %v966_v28 = vsub.f32 %v947_v21, %v953_v13  ;;  %v972_v29 = vsub.f32 %v950_v22, %v953_v13 }
 0x1f5   : > { %v955_v31 = vmul.f32 1.442695, %v954_v26  ;;  %v961_v34 = vmul.f32 1.442695, %v960_v27  ;;  %v967_v3 = vmul.f32 1.442695, %v966_v28 }
 0x1f6   : > { %v973_v5 = vmul.f32 1.442695, %v972_v29 }
 0x1f7   : > { %1444 = vpow2.f32 %v955_v31 }
 0x1f8   : > { %1446 = vpow2.f32 %v961_v34 }
 0x1f9   : > { %1448 = vpow2.f32 %v967_v3 }
 0x1fa   : > { %1450 = vpow2.f32 %v973_v5 }
 0x201   : > { %v1445_v32 = vpop.eup %1444 }
 0x202   : > { %v1447_v33 = vpop.eup %1446  ;;  %v958_v35 = vmul.f32 -0.94868326, %v1445_v32 }
 0x203   : > { %v1449_v36 = vpop.eup %1448  ;;  %v963_v40 = vadd.f32 %v1447_v33, %v1445_v32  ;;  %v964_v41 = vmul.f32 -0.31622776, %v1447_v33 }
 0x204   : > { %v1451_v42 = vpop.eup %1450  ;;  %v970_v44 = vmul.f32 0.31622776, %v1449_v36 }
 0x205   : > { %v969_v14 = vadd.f32 %v1449_v36, %v963_v40  ;;  %v965_v43 = vadd.f32 %v964_v41, %v958_v35  ;;  %v976_v47 = vmul.f32 0.94868326, %v1451_v42 }
 0x207   : > { %v971_v45 = vadd.f32 %v970_v44, %v965_v43  ;;  %v975_v46 = vadd.f32 %v1451_v42, %v969_v14 }
 0x209   : > { %v977_v48 = vadd.f32 %v976_v47, %v971_v45  ;;  %1452 = vrcp.f32 %v975_v46 }
 0x213   : > { %v1453_v15 = vpop.eup %1452 }
 0x214   : > { %v979_v49 = vmul.f32 %v1453_v15, %v977_v48 }
 0x216   : > { %980 = vst [vmem:[%s480_s11] sm:$0xff] %v979_v49 }
 0x217   : > { %1615 = shalt.err (!%p1612_p0)
}
 0x218   : > { %s1616_s15 = scalar_lea.hbm %s2133_s24, 128  ;;  %s1620_s27 = scalar_lea.hbm %s2238_s18, 256 }
 0x219   : > { %p1617_p3 = scmp.ne.s32.totalorder %s2133_s24, %s1616_s15  ;;  %p1621_p11 = scmp.lt.u32.totalorder %s2133_s24, %s2238_s18 }
 0x21a   : > { %p1622_p2 = scmp.lt.u32.totalorder %s1620_s27, %s1616_s15  ;;  %p1624_p9 = scmp.lt.u32.totalorder %s1616_s15, %s2133_s24 }
 0x21b   : > { %p1618_p13 = pnand %p1617_p3, %p2239_p10 }
 0x21c   : > { %p1623_p7 = por %p1622_p2, %p1621_p11 }
 0x21d   : > { %p1619_p12 = pneg %p1618_p13 }
 0x21e   : > { %p1625_p8 = por %p1624_p9, %p1623_p7 }
 0x220   : > { %p1626_p1 = pnand %p1625_p8, %p1619_p12 }
 0x222   : > { %1629 = shalt.err (!%p1626_p1)
}
 0x223   : > { %1372 = dma.vmem_to_hbm [thread:$0]  (%p2239_p10), %s2135_s29, 128, %s2133_s24, %s982_s20  }
 0x224 PF: > { %s2240_s21 = sld [smem:[#allocation17_spill]]  ;;  %s2241_s28 = sld [smem:[#allocation22_spill]] }
 0x225   : > { %p2243_p6 = scmp.ge.s32.totalorder %s1680_s12, 2 }
 0x22a   : > { %s1007_s26 = sand.u32 1, %s2240_s21   ;;  %p2242_p5 = scmp.ne.s32.totalorder %s2241_s28, 0 }
 0x22b   : > { %s1008_s23 = scalar_lea.sflag [#allocation4], %s1007_s26 }
 0x22c   : > { %p1392_p4 = pnand %p2243_p6, %p2242_p5 }
 0x22e   : > { %1663 = dma.done.wait (!%p1392_p4), %s1008_s23, 128  }
 0x22f   : > { %1665 = vsyncadd (!%p1392_p4), %s1008_s23, 4294967168  ;;  %s2244_s12 = sld [smem:[#allocation19_spill]]  ;;  %s2245_s11 = sld [smem:[#allocation18_spill]] }
 0x230   : > { %s2246_s7 = sld [smem:[#allocation20_spill]]  ;;  %s2247_s30 = smov %s1672_s10 }
 0x235   : > { %p28_p0 = scmp.ge.s32.totalorder %s2244_s12, 4   ;;  %s2248_s10 = smov %s2245_s11 }
 0x236   : > { %s2249_s11 = smov %s2246_s7 }
 0x237   :  { %30 = sbr.rel (!%p28_p0) target bundleno = 13 (0xd), region = 145 }
 0x23e   :  { %1013 = vsyncpa [#allocation3], 1 }
 0x23f   :  { %1015 = vsyncpa [#allocation3 + $0x1], 1 }
 0x240   :  { %1016 = vsyncpa [#allocation6], 1 }
 0x241   :  { %1018 = vsyncpa [#allocation6 + $0x1], 1 }
 0x242   :  { %1019 = vsyncpa [#allocation9], 1 }
 0x243   :  { %1021 = vsyncpa [#allocation9 + $0x1], 1 }
 0x244   :  { %1022 = vsyncpa [#allocation4], 1 }
 0x245   :  { %1024 = vsyncpa [#allocation4 + $0x1], 1 }

</bundles_post_ra>
